<compile_context>
chip_gen: v5e
topology: v5e:2x2
jax: 0.10.0
libtpu: 0.0.40
codegen_flags: <defaults>
</compile_context>

<pallas_src>
import functools

import jax
import jax.numpy as jnp
from jax.experimental import pallas as pl
from jax.experimental.pallas import tpu as pltpu

_LANES = 128


def _cdiv(a, b):
    return -(-a // b)


def _round_up(x, m):
    return ((x + m - 1) // m) * m


def _chip_defaults():
    """Returns (target block bytes per input, allow 2-chunk TensorCore split)."""
    try:
        kind = jax.devices()[0].device_kind.lower()
    except Exception:
        kind = ""
    if "v6" in kind:
        return 4 << 20, False            # v6e: 1 TC, 32 MiB scoped VMEM default
    if "v7" in kind or "tpu7" in kind:
        return 4 << 20, True             # v7x: 2 TCs, 64 MiB per-TC VMEM
    if "v5" in kind and ("lite" in kind or "5e" in kind):
        return 2 << 20, False            # v5e: 16 MiB scoped VMEM default
    return 2 << 20, False                # v4 / v5p / unknown: conservative


# ---------------------------------------------------------------------------
# Kernel
# ---------------------------------------------------------------------------
def _loss_kernel(x_ref, y_ref, *rest, block_rows, rows_valid, blocks_per_chunk,
                 need_mask, inv_n, l2_scale, has_params):
    """Accumulates sum((x-y)^2); epilogue scales by 1/n and adds the L2 term."""
    if has_params:
        p_ref, o_ref, acc_ref = rest
    else:
        o_ref, acc_ref = rest

    c = pl.program_id(0)      # chunk (TC split on v7x; size 1 elsewhere)
    i = pl.program_id(1)      # block within chunk (reduction axis)

    @pl.when(i == 0)
    def _():
        acc_ref[...] = jnp.zeros_like(acc_ref)

    x = x_ref[...].astype(jnp.float32)
    y = y_ref[...].astype(jnp.float32)

    if need_mask:
        # Logical (unclamped) row offset of this block.
        base = (c * blocks_per_chunk + i) * block_rows
        is_full = base + block_rows <= rows_valid

        @pl.when(is_full)
        def _():
            d = x - y
            acc_ref[...] += jnp.sum(d * d, axis=0, keepdims=True)

        @pl.when(jnp.logical_not(is_full))
        def _():
            d = x - y
            sq = d * d
            row_ids = base + jax.lax.broadcasted_iota(jnp.int32, sq.shape, 0)
            # Select (NOT multiply-by-mask): pad garbage may be NaN/Inf.
            sq = jnp.where(row_ids < rows_valid, sq, 0.0)
            acc_ref[...] += jnp.sum(sq, axis=0, keepdims=True)
    else:
        d = x - y
        acc_ref[...] += jnp.sum(d * d, axis=0, keepdims=True)

    @pl.when(i == pl.num_programs(1) - 1)
    def _():
        partial = jnp.sum(acc_ref[...]) * inv_n
        if has_params:
            @pl.when(c == 0)
            def _():
                p = p_ref[...].astype(jnp.float32)
                o_ref[0, 0] = partial + jnp.sum(p * p) * l2_scale

            @pl.when(c != 0)
            def _():
                o_ref[0, 0] = partial
        else:
            o_ref[0, 0] = partial


# ---------------------------------------------------------------------------
# Wrapper
# ---------------------------------------------------------------------------
@functools.partial(jax.jit, static_argnames=("l2_weight", "_block_rows_cap"))
def image_loss(reconstructed, gt, params, l2_weight, _block_rows_cap=None):
    """Pallas implementation of image_loss.forward (single-launch loss)."""
    n = int(reconstructed.size)
    inv_n = 1.0 / float(n)

    # Pack the (tiny) parameter list into one lane-padded block so the L2 term
    # is computed inside the same kernel launch (epilogue of the last step).
    total_params = sum(int(p.size) for p in params)
    has_params = total_params > 0
    if has_params:
        flat = [jnp.asarray(p).reshape(-1).astype(jnp.float32) for p in params]
        pvec = flat[0] if len(flat) == 1 else jnp.concatenate(flat)
        p_rows = max(8, _round_up(_cdiv(total_params, _LANES), 8))
        pvec = jnp.pad(pvec, (0, p_rows * _LANES - total_params))
        p_packed = pvec.reshape(p_rows, _LANES)
        l2_scale = float(l2_weight) / float(total_params)
    else:
        p_packed = None
        l2_scale = 0.0

    n128 = (n // _LANES) * _LANES
    rem = n - n128

    if n128 == 0:
        # Degenerate tiny input: pure-jnp fallback.
        d = reconstructed.astype(jnp.float32) - gt.astype(jnp.float32)
        loss = jnp.sum(d * d) * jnp.float32(inv_n)
        if has_params:
            l2 = sum(jnp.sum(p.astype(jnp.float32) ** 2) for p in params)
            loss = loss + jnp.float32(l2_scale) * l2
        return loss

    rows = n128 // _LANES
    if rem == 0:
        # Lane-aligned: zero-copy reshape of the original (contiguous) arrays.
        x2 = reconstructed.reshape(rows, _LANES)
        y2 = gt.reshape(rows, _LANES)
    else:
        # Ragged: the prefix slice may materialize a copy; the <128-element
        # tail is added with a tiny jnp sum below.
        # TODO(synk): a pl.ANY + manual 128-aligned DMA path would avoid the
        # prefix copy if ragged sizes become common.
        x2 = reconstructed.reshape(-1)[:n128].reshape(rows, _LANES)
        y2 = gt.reshape(-1)[:n128].reshape(rows, _LANES)

    # --- per-chip block sizing (constant block bytes across dtypes) ---------
    target_bytes, allow_two = _chip_defaults()
    itemsize = max(reconstructed.dtype.itemsize, gt.dtype.itemsize)
    row_align = max(8, 32 // itemsize)            # 8 for f32, 16 for bf16, ...
    cap = max(row_align,
              (target_bytes // (_LANES * itemsize)) // row_align * row_align)
    if _block_rows_cap is not None:               # test hook: small blocks
        allow_two = False
        cap = max(row_align, (_block_rows_cap // row_align) * row_align)

    if rows <= cap:
        block_rows = rows          # full-extent block (legal even if rows%8!=0)
        num_chunks = 1
        blocks_per_chunk = 1
    else:
        block_rows = cap
        total_blocks = _cdiv(rows, block_rows)
        num_chunks = 2 if (allow_two and total_blocks >= 8) else 1
        blocks_per_chunk = _cdiv(total_blocks, num_chunks)
        if num_chunks > 1:
            # Re-derive block_rows so both chunks cover only real blocks
            # (no fully-dead padded fetch).
            padded = num_chunks * blocks_per_chunk
            block_rows = min(cap, _round_up(_cdiv(rows, padded), row_align))

    padded_blocks = num_chunks * blocks_per_chunk
    actual_blocks = _cdiv(rows, block_rows)
    need_clamp = actual_blocks < padded_blocks    # rare fallback only
    need_mask = padded_blocks * block_rows > rows

    if need_clamp:
        last_block = actual_blocks - 1

        def idx_map(c, i):
            return (jnp.minimum(c * blocks_per_chunk + i, last_block), 0)
    elif num_chunks > 1:
        def idx_map(c, i):
            return (c * blocks_per_chunk + i, 0)
    else:
        def idx_map(c, i):
            return (i, 0)

    kernel = functools.partial(
        _loss_kernel,
        block_rows=block_rows,
        rows_valid=rows,
        blocks_per_chunk=blocks_per_chunk,
        need_mask=need_mask,
        inv_n=inv_n,
        l2_scale=l2_scale,
        has_params=has_params,
    )

    # 3-deep input buffering hides the per-step DMA handoff on long streams.
    if blocks_per_chunk >= 3 and hasattr(pl, "Buffered"):
        in_spec = pl.BlockSpec((block_rows, _LANES), idx_map,
                               pipeline_mode=pl.Buffered(3))
    else:
        in_spec = pl.BlockSpec((block_rows, _LANES), idx_map)

    in_specs = [in_spec, in_spec]
    args = [x2, y2]
    if has_params:
        in_specs.append(
            pl.BlockSpec((p_packed.shape[0], _LANES), lambda c, i: (0, 0)))
        args.append(p_packed)

    if num_chunks > 1:
        # Only reached on v7x with large images: split chunks across the 2 TCs.
        first_sem = getattr(pltpu, "CORE_PARALLEL", pltpu.PARALLEL)
        dims = (first_sem, pltpu.ARBITRARY)
    else:
        dims = (pltpu.ARBITRARY, pltpu.ARBITRARY)

    cost = pl.CostEstimate(
        flops=3 * n128 + 2 * total_params,
        transcendentals=0,
        bytes_accessed=2 * n128 * itemsize
        + (p_packed.size * 4 if has_params else 0) + 4 * num_chunks,
    )

    partials = pl.pallas_call(
        kernel,
        out_shape=jax.ShapeDtypeStruct((num_chunks, 1), jnp.float32),
        grid_spec=pltpu.PrefetchScalarGridSpec(
            num_scalar_prefetch=0,
            grid=(num_chunks, blocks_per_chunk),
            in_specs=in_specs,
            out_specs=pl.BlockSpec((1, 1), lambda c, i: (c, 0),
                                   memory_space=pltpu.SMEM),
            scratch_shapes=[pltpu.VMEM((1, _LANES), jnp.float32)],
        ),
        compiler_params=pltpu.CompilerParams(
            dimension_semantics=dims,
            vmem_limit_bytes=32 * 1024 * 1024,
        ),
        cost_estimate=cost,
    )(*args)

    loss = partials[0, 0] if num_chunks == 1 else jnp.sum(partials)

    if rem > 0:
        tx = reconstructed.reshape(-1)[n128:].astype(jnp.float32)
        ty = gt.reshape(-1)[n128:].astype(jnp.float32)
        loss = loss + jnp.sum((tx - ty) ** 2) * jnp.float32(inv_n)

    return loss


# ---------------------------------------------------------------------------
# Pure-JAX reference (for self-check)
# ---------------------------------------------------------------------------
def image_loss_ref(reconstructed, gt, params, l2_weight):
    r = reconstructed.astype(jnp.float32)
    g = gt.astype(jnp.float32)
    mse = jnp.mean((r - g) ** 2)
    total_params = sum(int(p.size) for p in params)
    l2 = sum(jnp.sum(p.astype(jnp.float32) ** 2) for p in params) / total_params
    return mse + l2_weight * l2


if __name__ == "__main__":
    key = jax.random.PRNGKey(0)
    keys = jax.random.split(key, 10)

    # Deterministic synthetic "model params" (list of tensors of varied shape).
    params = [
        jax.random.normal(keys[2], (32, 64), dtype=jnp.float32) * 0.1,
        jax.random.normal(keys[3], (32,), dtype=jnp.float32) * 0.1,
        jax.random.normal(keys[4], (64, 32), dtype=jnp.float32) * 0.1,
        jax.random.normal(keys[5], (64,), dtype=jnp.float32) * 0.1,
    ]
    l2_weight = 1e-4

    # --- Test 1: lane-aligned NCHW image → single full-extent block + fused
    # L2 term (single launch, functa regime). ---------------------------------
    rec1 = jax.random.normal(keys[0], (2, 4, 16, 16), dtype=jnp.float32)
    gt1 = jax.random.normal(keys[1], (2, 4, 16, 16), dtype=jnp.float32)
    out1 = image_loss(rec1, gt1, params, l2_weight)
    jax.block_until_ready(out1)
    ref1 = image_loss_ref(rec1, gt1, params, l2_weight)
    assert jnp.allclose(out1, ref1, rtol=1e-5, atol=1e-5), (out1, ref1)

    # --- Test 2: odd sizes → non-lane-aligned tail + full-extent block whose
    # row count is not a multiple of 8. ---------------------------------------
    rec2 = jax.random.normal(keys[6], (2, 3, 33, 37), dtype=jnp.float32)
    gt2 = jax.random.normal(keys[7], (2, 3, 33, 37), dtype=jnp.float32)
    out2 = image_loss(rec2, gt2, params, l2_weight)
    jax.block_until_ready(out2)
    ref2 = image_loss_ref(rec2, gt2, params, l2_weight)
    assert jnp.allclose(out2, ref2, rtol=1e-5, atol=1e-5), (out2, ref2)

    # --- Test 3: force small blocks to exercise the multi-block pipeline,
    # Buffered(3) input prefetch and the pl.when-gated edge mask. -------------
    rec3 = jax.random.normal(keys[8], (2, 4, 130, 130), dtype=jnp.float32)
    gt3 = jax.random.normal(keys[9], (2, 4, 130, 130), dtype=jnp.float32)
    out3 = image_loss(rec3, gt3, params, l2_weight, _block_rows_cap=64)
    jax.block_until_ready(out3)
    ref3 = image_loss_ref(rec3, gt3, params, l2_weight)
    assert jnp.allclose(out3, ref3, rtol=1e-5, atol=1e-5), (out3, ref3)

    print("KERNEL_OK")
</pallas_src>

<mosaic_0001>
module attributes {stable_mosaic.version = 11 : i64} {
  func.func @_loss_kernel(%arg0: i32, %arg1: i32, %arg2: memref<16x128xf32, #tpu.memory_space<vmem>>, %arg3: memref<16x128xf32, #tpu.memory_space<vmem>>, %arg4: memref<40x128xf32, #tpu.memory_space<vmem>>, %arg5: memref<1x1xf32, #tpu.memory_space<smem>>, %arg6: memref<1x128xf32, #tpu.memory_space<vmem>>) attributes {dimension_semantics = [#tpu.dimension_semantics<arbitrary>, #tpu.dimension_semantics<arbitrary>], iteration_bounds = array<i64: 1, 1>, scalar_prefetch = 0 : i64, scratch_operands = 1 : i64, tpu.core_type = #tpu.core_type<tc>, window_params = [{transform_indices = @transform_0, window_bounds = array<i64: 16, 128>}, {transform_indices = @transform_1, window_bounds = array<i64: 16, 128>}, {pipeline_mode = #tpu.pipeline_mode<synchronous>, transform_indices = @transform_2, window_bounds = array<i64: 40, 128>}, {transform_indices = @transform_3, window_bounds = array<i64: 1, 1>}]} {
    %c0_i32 = arith.constant 0 : i32
    %0 = arith.cmpi eq, %arg1, %c0_i32 : i32
    %1 = arith.extui %0 : i1 to i32
    %c0_i32_0 = arith.constant 0 : i32
    %2 = arith.cmpi ne, %1, %c0_i32_0 : i32
    scf.if %2 {
      %cst_10 = arith.constant 0.000000e+00 : f32
      %15 = vector.broadcast %cst_10 : f32 to vector<1x128xf32>
      %c0_11 = arith.constant 0 : index
      %c0_12 = arith.constant 0 : index
      %16 = vector.load %arg6[%c0_11, %c0_12] : memref<1x128xf32, #tpu.memory_space<vmem>>, vector<1x128xf32>
      tpu.vector_store %arg6[%c0_11, %c0_12], %15 {strides = array<i32>} : memref<1x128xf32, #tpu.memory_space<vmem>>, vector<1x128xf32>,
    } else {
    }
    %c0 = arith.constant 0 : index
    %c0_1 = arith.constant 0 : index
    %3 = vector.load %arg2[%c0, %c0_1] : memref<16x128xf32, #tpu.memory_space<vmem>>, vector<16x128xf32>
    %c0_2 = arith.constant 0 : index
    %c0_3 = arith.constant 0 : index
    %4 = vector.load %arg3[%c0_2, %c0_3] : memref<16x128xf32, #tpu.memory_space<vmem>>, vector<16x128xf32>
    %5 = arith.subf %3, %4 : vector<16x128xf32>
    %c0_4 = arith.constant 0 : index
    %c0_5 = arith.constant 0 : index
    %6 = vector.load %arg6[%c0_4, %c0_5] : memref<1x128xf32, #tpu.memory_space<vmem>>, vector<1x128xf32>
    %7 = arith.mulf %5, %5 : vector<16x128xf32>
    %cst = arith.constant dense<0.000000e+00> : vector<128xf32>
    %8 = vector.multi_reduction <add>, %7, %cst [0] : vector<16x128xf32> to vector<128xf32>
    %9 = vector.shape_cast %8 : vector<128xf32> to vector<1x128xf32>
    %10 = arith.addf %6, %9 : vector<1x128xf32>
    %c0_6 = arith.constant 0 : index
    %c0_7 = arith.constant 0 : index
    %11 = vector.load %arg6[%c0_6, %c0_7] : memref<1x128xf32, #tpu.memory_space<vmem>>, vector<1x128xf32>
    tpu.vector_store %arg6[%c0_6, %c0_7], %10 {strides = array<i32>} : memref<1x128xf32, #tpu.memory_space<vmem>>, vector<1x128xf32>,
    %c0_i32_8 = arith.constant 0 : i32
    %12 = arith.cmpi eq, %arg1, %c0_i32_8 : i32
    %13 = arith.extui %12 : i1 to i32
    %c0_i32_9 = arith.constant 0 : i32
    %14 = arith.cmpi ne, %13, %c0_i32_9 : i32
    scf.if %14 {
      %c0_10 = arith.constant 0 : index
      %c0_11 = arith.constant 0 : index
      %15 = vector.load %arg6[%c0_10, %c0_11] : memref<1x128xf32, #tpu.memory_space<vmem>>, vector<1x128xf32>
      %16 = vector.shape_cast %15 : vector<1x128xf32> to vector<1x1x128xf32>
      %cst_12 = arith.constant dense<0.000000e+00> : vector<1xf32>
      %17 = vector.multi_reduction <add>, %16, %cst_12 [1, 2] : vector<1x1x128xf32> to vector<1xf32>
      %18 = vector.shape_cast %17 : vector<1xf32> to vector<1x1x1xf32>
      %19 = vector.extract %18[0, 0, 0] : f32 from vector<1x1x1xf32>
      %cst_13 = arith.constant 4.8828125E-4 : f32
      %20 = arith.mulf %19, %cst_13 : f32
      %c0_i32_14 = arith.constant 0 : i32
      %21 = arith.cmpi eq, %arg0, %c0_i32_14 : i32
      %22 = arith.extui %21 : i1 to i32
      %c0_i32_15 = arith.constant 0 : i32
      %23 = arith.cmpi ne, %22, %c0_i32_15 : i32
      scf.if %23 {
        %c0_18 = arith.constant 0 : index
        %c0_19 = arith.constant 0 : index
        %27 = vector.load %arg4[%c0_18, %c0_19] : memref<40x128xf32, #tpu.memory_space<vmem>>, vector<40x128xf32>
        %28 = arith.mulf %27, %27 : vector<40x128xf32>
        %29 = vector.shape_cast %28 : vector<40x128xf32> to vector<1x40x128xf32>
        %cst_20 = arith.constant dense<0.000000e+00> : vector<1xf32>
        %30 = vector.multi_reduction <add>, %29, %cst_20 [1, 2] : vector<1x40x128xf32> to vector<1xf32>
        %31 = vector.shape_cast %30 : vector<1xf32> to vector<1x1x1xf32>
        %32 = vector.extract %31[0, 0, 0] : f32 from vector<1x1x1xf32>
        %cst_21 = arith.constant 2.38549624E-8 : f32
        %33 = arith.mulf %32, %cst_21 : f32
        %34 = arith.addf %20, %33 : f32
        %c0_22 = arith.constant 0 : index
        %c0_23 = arith.constant 0 : index
        %35 = memref.load %arg5[%c0_22, %c0_23] : memref<1x1xf32, #tpu.memory_space<smem>>
        memref.store %34, %arg5[%c0_22, %c0_23] : memref<1x1xf32, #tpu.memory_space<smem>>
      } else {
      }
      %c0_i32_16 = arith.constant 0 : i32
      %24 = arith.cmpi ne, %arg0, %c0_i32_16 : i32
      %25 = arith.extui %24 : i1 to i32
      %c0_i32_17 = arith.constant 0 : i32
      %26 = arith.cmpi ne, %25, %c0_i32_17 : i32
      scf.if %26 {
        %c0_18 = arith.constant 0 : index
        %c0_19 = arith.constant 0 : index
        %27 = memref.load %arg5[%c0_18, %c0_19] : memref<1x1xf32, #tpu.memory_space<smem>>
        memref.store %20, %arg5[%c0_18, %c0_19] : memref<1x1xf32, #tpu.memory_space<smem>>
      } else {
      }
    } else {
    }
    return
  }
  func.func @transform_0(%arg0: i32, %arg1: i32) -> (i32, i32) {
    %c0_i32 = arith.constant 0 : i32
    %c0_i32_0 = arith.constant 0 : i32
    return %arg1, %c0_i32 : i32, i32
  }
  func.func @transform_1(%arg0: i32, %arg1: i32) -> (i32, i32) {
    %c0_i32 = arith.constant 0 : i32
    %c0_i32_0 = arith.constant 0 : i32
    return %arg1, %c0_i32 : i32, i32
  }
  func.func @transform_2(%arg0: i32, %arg1: i32) -> (i32, i32) {
    %c0_i32 = arith.constant 0 : i32
    %c0_i32_0 = arith.constant 0 : i32
    %c0_i32_1 = arith.constant 0 : i32
    return %c0_i32, %c0_i32_0 : i32, i32
  }
  func.func @transform_3(%arg0: i32, %arg1: i32) -> (i32, i32) {
    %c0_i32 = arith.constant 0 : i32
    %c0_i32_0 = arith.constant 0 : i32
    return %arg0, %c0_i32 : i32, i32
  }
}

</mosaic_0001>

<bundles_post_ra>
// kernel: image_loss.1
= control target key start
LH: loop header
LB: loop body
LE: loop exit
PB: predicated region body
PF: predicated region fallthrough
CT: control target
= control target key end

     0   :  { %v126_v3 = vmov 0.0   ;;  %s178_s0 = inlined_call_operand.vmem [shape: f32[16,128], index: 0, kind: input, shape index: {}]   ;;  %s179_s1 = inlined_call_operand.vmem [shape: f32[16,128], index: 1, kind: input, shape index: {}]   ;;  %s180_s2 = inlined_call_operand.vmem [shape: f32[40,128], index: 2, kind: input, shape index: {}]   ;;  %s181_s3 = inlined_call_operand.hbm [shape: f32[1,1], index: 3, kind: output, shape index: {}]  }
   0x1   :  { %v20_v0 = vld [vmem:[%s178_s0] sm:$0xff]  ;;  %v21_v1 = vld [vmem:[%s178_s0 + $0x8] sm:$0xff]  ;;  %19 = vst [vmem:[#allocation2] sm:$0x1] %v126_v3 }
   0x2   :  { %v22_v2 = vld [vmem:[%s179_s1] sm:$0xff]  ;;  %v23_v4 = vld [vmem:[%s179_s1 + $0x8] sm:$0xff] }
   0x3   :  { %v24_v5 = vsub.f32 %v20_v0, %v22_v2  ;;  %v25_v6 = vsub.f32 %v21_v1, %v23_v4 }
   0x5   :  { %v27_v7 = vmul.f32 %v24_v5, %v24_v5 }
   0x6   :  { %8 = vsyncpa [#allocation4], 0  ;;  %v28_v8 = vmul.f32 %v25_v6, %v25_v6  ;;  %v58_v15 = vld [vmem:[%s180_s2] sm:$0xff]  ;;  %v59_v16 = vld [vmem:[%s180_s2 + $0x8] sm:$0xff]  ;;  %vm42_vm0 = vcmask 1040384   ;;  %s96_s30 = sshll.u32 %s181_s3, 4  ;;  %s97_s30 = int_to_ptr.hbm [resolvable:$true] %s96_s30 }
   0x7   :  { %v63_v19 = vmul.f32 %v58_v15, %v58_v15  ;;  %v64_v20 = vmul.f32 %v59_v16, %v59_v16  ;;  %v60_v22 = vld [vmem:[%s180_s2 + $0x10] sm:$0xff]  ;;  %v61_v25 = vld [vmem:[%s180_s2 + $0x18] sm:$0xff]  ;;  %v62_v28 = vld [vmem:[%s180_s2 + $0x20] sm:$0xff]  ;;  %s127_s8 = smov [#allocation3]  }
   0x8   :  { %v29_v9 = vadd.f32 %v28_v8, %v27_v7  ;;  %v26_v17 = vld [vmem:[#allocation2] sm:$0x1]  ;;  %v65_v23 = vmul.f32 %v60_v22, %v60_v22  ;;  %v66_v26 = vmul.f32 %v61_v25, %v61_v25  ;;  %v67_v31 = vmul.f32 %v62_v28, %v62_v28 }
   0x9   :  { %v68_v24 = vadd.f32 %v64_v20, %v63_v19 }
   0xa   :  { %v30_v10 = vrot.slane %v29_v9, 4 }
   0xb   :  { %v69_v27 = vadd.f32 %v68_v24, %v65_v23 }
   0xc   :  { %v31_v11 = vadd.f32 %v30_v10, %v29_v9 }
   0xd   :  { %v70_v32 = vadd.f32 %v69_v27, %v66_v26 }
   0xe   :  { %v32_v12 = vrot.slane %v31_v11, 2 }
   0xf   :  { %v71_v33 = vadd.f32 %v70_v32, %v67_v31 }
  0x10   :  { %v33_v13 = vadd.f32 %v32_v12, %v31_v11 }
  0x12   :  { %v34_v14 = vrot.slane %v33_v13, 1 }
  0x14   :  { %v35_v18 = vadd.f32 %v34_v14, %v33_v13 }
  0x16   :  { %v36_v21 = vadd.f32 %v35_v18, %v26_v17 }
  0x18   :  { %37 = vst [vmem:[#allocation2] sm:$0x1] %v36_v21 }
  0x1f   :  { %v41_v29 = vld [vmem:[#allocation2] sm:$0x1] }
  0x20   :  { %v43_v30 = vsel %vm42_vm0, %v41_v29, 0.0 }
  0x21   :  { %44 = vadd.xlane.f32.xlu0 %v43_v30 }
  0x29   :  { %72 = vadd.xlane.f32.xlu0 %v71_v33 }
  0x94   :  { %v45_v34 = vpop.xlane.xlu0 %44 }
  0x95   :  { %v46_v35 = vrot.slane %v45_v34, 4 }
  0x97   :  { %v47_v36 = vadd.f32 %v46_v35, %v45_v34 }
  0x99   :  { %v48_v37 = vrot.slane %v47_v36, 2 }
  0x9b   :  { %v49_v38 = vadd.f32 %v48_v37, %v47_v36 }
  0x9c   :  { %v73_v39 = vpop.xlane.xlu0 %72 }
  0x9d   :  { %v74_v40 = vrot.slane %v73_v39, 4  ;;  %v50_v41 = vrot.slane %v49_v38, 1 }
  0x9f   :  { %v75_v42 = vadd.f32 %v74_v40, %v73_v39  ;;  %v51_v43 = vadd.f32 %v50_v41, %v49_v38 }
  0xa1   :  { %v76_v44 = vrot.slane %v75_v42, 2  ;;  %106 = vpush %v51_v43 }
  0xa3   :  { %v77_v45 = vadd.f32 %v76_v44, %v75_v42 }
  0xa5   :  { %v78_v46 = vrot.slane %v77_v45, 1 }
  0xa7   :  { %v79_v47 = vadd.f32 %v78_v46, %v77_v45 }
  0xa9   :  { %108 = vpush %v79_v47 }
  0xd2   :  { %s107_s2 = spop %106 }
  0xd3   :  { %s53_s4 = smul.f32 0.00048828125, %s107_s2 }
  0xda   :  { %s109_s5 = spop %108 }
  0xdb   :  { %s81_s6 = smul.f32 2.3854962e-08, %s109_s5 }
  0xdd   :  { %s82_s7 = sadd.f32 %s81_s6, %s53_s4 }
  0xdf   :  { %84 = sst [smem:[#allocation3]] %s82_s7 }
  0xe0   :  { %99 = dma.smem_to_hbm %s127_s8, 16, %s97_s30, [#allocation4]  }
  0xe1   :  { %124 = dma.done.wait [#allocation4], 16  }
  0xe2   :  { %125 = vsyncadd [#allocation4], 4294967280 }
  0xe3   :  { %104 = sfence }
  0xe4   :  { %105 = vsyncpa [#allocation4], 1 }

</bundles_post_ra>
